<compile_context>
chip_gen: v5e
topology: v5e:2x2
jax: 0.10.0
libtpu: 0.0.40
codegen_flags: <defaults>
</compile_context>

<pallas_src>
import functools

import jax
import jax.numpy as jnp
from jax import lax
from jax.experimental import pallas as pl
from jax.experimental.pallas import tpu as pltpu

A_PAD = 128          # lane-dense packed output width (one full vreg lane row)
NEG = -1e30          # finite "minus infinity" mask value
TB_CAP = 256         # batch-tile cap: multiple of 16; >=2 grid steps at B>=512
                     # (v7x dual-TC sharding) yet big enough to amortize the
                     # ~0.35us/step overhead on single-TC v5e/v6e.


def _policy_kernel(num_actions, x_ref, w_ref, b_ref, noise_ref, out_ref):
    A = num_actions
    x = x_ref[...]                       # (TB, D)     bfloat16
    w = w_ref[...]                       # (A_PAD, D)  bfloat16 (nn.Linear layout, zero-padded rows)
    b = b_ref[...]                       # (1, A_PAD)  float32
    E = noise_ref[...]                   # (TB, A_PAD) float32, iid Exp(1), > 0
    TB = x.shape[0]

    # logits = x @ w.T without an in-kernel transpose: contract last dims.
    logits = lax.dot_general(
        x, w, (((1,), (1,)), ((), ())),
        preferred_element_type=jnp.float32) + b          # (TB, A_PAD) f32
    mu = jnp.maximum(logits, 0.0)                        # relu(actor_linear(x))

    cid = lax.broadcasted_iota(jnp.int32, (TB, A_PAD), 1)
    valid = cid < A
    masked = jnp.where(valid, mu, NEG)                   # mask padded action columns

    # Numerically stable softmax / log-softmax over the valid columns (f32).
    m = jnp.max(masked, axis=-1, keepdims=True)
    shifted = masked - m
    e = jnp.exp(shifted)                                 # padded cols -> 0
    s = jnp.sum(e, axis=-1, keepdims=True)
    log_s = jnp.log(s)
    logp = shifted - log_s                               # padded cols ~ NEG

    # entropy = -(sum p * logp) = -(sum e * logp) * (1/s); approx recip -> EUP.
    inv_s = pl.reciprocal(s, approx=True)
    ent_num = jnp.sum(jnp.where(valid, e * logp, 0.0), axis=-1, keepdims=True)
    ent = -ent_num * inv_s                               # (TB, 1)

    # Test-mode argmax: reuse the softmax row max m (no extra XLU reduction
    # over logp).  Ties resolve to the lowest index.
    act_argmax = jnp.min(jnp.where(masked == m, cid, A_PAD),
                         axis=-1, keepdims=True)         # (TB, 1) int32

    # Training-mode sampling via the exponential race (== multinomial over
    # softmax(mu)): argmax_i e_i / E_i with E_i ~ Exp(1).  Reuses `e`; no
    # in-kernel logs.
    race = jnp.where(valid, e * pl.reciprocal(E, approx=True), -1.0)
    rmax = jnp.max(race, axis=-1, keepdims=True)
    act_sample = jnp.min(jnp.where(race == rmax, cid, A_PAD),
                         axis=-1, keepdims=True)         # (TB, 1) int32

    # Gather log_prob at the sampled action (mask + reduce, no real gather).
    logp_sel = jnp.sum(jnp.where(cid == act_sample, logp, 0.0),
                       axis=-1, keepdims=True)

    # One lane-dense (TB, 128) store:
    # [ logp(0..A-1) | ent | logp_sel | act_sample | act_argmax | zeros ]
    packed = jnp.where(valid, logp, 0.0)
    packed = jnp.where(cid == A, ent, packed)
    packed = jnp.where(cid == A + 1, logp_sel, packed)
    packed = jnp.where(cid == A + 2, act_sample.astype(jnp.float32), packed)
    packed = jnp.where(cid == A + 3, act_argmax.astype(jnp.float32), packed)
    out_ref[...] = packed


def _round_up(n, m):
    return ((n + m - 1) // m) * m


@jax.jit
def policy_head(x, w, b, key):
    """Fused actor head.

    Returns (log_prob (B,A), entropy (B,1), log_prob_sel (B,1),
             sampled_action (B,), argmax_action (B,)).
    """
    B, D = x.shape
    A = w.shape[0]
    assert A + 4 <= A_PAD, "num_actions too large for the packed output slab"

    # Batch padding / tiling: pad rows to a multiple of 16 (bf16 sublane) and
    # of the tile; cap the tile at TB_CAP so large batches get >=2 grid steps.
    B_pad = _round_up(max(B, 8), 16)
    TB = min(B_pad, TB_CAP)
    B_pad = _round_up(B_pad, TB)

    # Layout plumbing at the wrapper boundary (fused by XLA): bf16 matmul
    # operands, weight rows / bias / batch zero-padded to tile boundaries.
    x_bf = jnp.zeros((B_pad, D), jnp.bfloat16).at[:B].set(x.astype(jnp.bfloat16))
    w_pad = jnp.zeros((A_PAD, D), jnp.bfloat16).at[:A].set(w.astype(jnp.bfloat16))
    b_pad = jnp.zeros((1, A_PAD), jnp.float32).at[:, :A].set(
        b.reshape(1, A).astype(jnp.float32))
    # iid Exp(1) race noise, clamped strictly positive (avoid 1/0 in-kernel).
    noise = jnp.maximum(
        jax.random.exponential(key, (B_pad, A_PAD), dtype=jnp.float32), 1e-12)

    kernel = functools.partial(_policy_kernel, A)
    grid_spec = pltpu.PrefetchScalarGridSpec(
        num_scalar_prefetch=0,
        grid=(B_pad // TB,),
        in_specs=[
            pl.BlockSpec((TB, D), lambda i: (i, 0)),        # x
            pl.BlockSpec((A_PAD, D), lambda i: (0, 0)),     # w (padded)
            pl.BlockSpec((1, A_PAD), lambda i: (0, 0)),     # b (padded)
            pl.BlockSpec((TB, A_PAD), lambda i: (i, 0)),    # Exp(1) noise
        ],
        out_specs=pl.BlockSpec((TB, A_PAD), lambda i: (i, 0)),
    )
    cost = pl.CostEstimate(
        flops=2 * B_pad * D * A_PAD,
        transcendentals=3 * B_pad * A_PAD,
        bytes_accessed=(2 * (B_pad * D + A_PAD * D)
                        + 4 * (A_PAD + 2 * B_pad * A_PAD)),
    )
    packed = pl.pallas_call(
        kernel,
        grid_spec=grid_spec,
        out_shape=jax.ShapeDtypeStruct((B_pad, A_PAD), jnp.float32),
        compiler_params=pltpu.CompilerParams(
            dimension_semantics=("parallel",),
            vmem_limit_bytes=32 * 1024 * 1024,
        ),
        cost_estimate=cost,
    )(x_bf, w_pad, b_pad, noise)

    packed = packed[:B]
    log_prob = packed[:, :A]
    entropy = packed[:, A:A + 1]
    log_prob_sel = packed[:, A + 1:A + 2]
    act_sample = packed[:, A + 2].astype(jnp.int32)
    act_argmax = packed[:, A + 3].astype(jnp.int32)
    return log_prob, entropy, log_prob_sel, act_sample, act_argmax


def norm_col_init(key, shape, std=0.1):
    # Replicates norm_col_init: x = randn; x *= std / sqrt(sum(x**2, dim=1, keepdim=True))
    x = jax.random.normal(key, shape, dtype=jnp.float32)
    return x * (std / jnp.sqrt(jnp.sum(x * x, axis=1, keepdims=True)))


def policy_net_forward(x, w, b, key, test=False):
    """Mirror of PolicyNet.forward + sample_action (non-noisy branch).

    test=True : (argmax_action (B,), entropy (B,1), full log_prob (B,A))
    test=False: (sampled_action (B,1), entropy (B,1), gathered log_prob (B,1))
    """
    log_prob, entropy, log_prob_sel, act_sample, act_argmax = policy_head(
        x, w, b, key)
    if test:
        return act_argmax, entropy, log_prob
    action = act_sample[:, None]                  # (B, 1), like prob.multinomial(1)
    return action, entropy, log_prob_sel


if __name__ == "__main__":
    key = jax.random.PRNGKey(0)
    k_x, k_w, k_s = jax.random.split(key, 3)

    batch = 8
    input_dim = 32       # feature dim fed to the actor head
    num_actions = 8      # action_space.n

    # Deterministic parameter init matching PolicyNet.__init__ (non-noisy).
    w = norm_col_init(k_w, (num_actions, input_dim), std=0.1)
    b = jnp.zeros((1, num_actions), dtype=jnp.float32)
    x = jax.random.normal(k_x, (batch, input_dim), dtype=jnp.float32)

    # Stochastic path (training-time sample_action).
    action_env, entropy, log_prob_sel = policy_net_forward(x, w, b, k_s, test=False)
    jax.block_until_ready((action_env, entropy, log_prob_sel))

    # Deterministic path (test=True).
    action_t, entropy_t, log_prob_t = policy_net_forward(x, w, b, k_s, test=True)
    jax.block_until_ready((action_t, entropy_t, log_prob_t))

    # Pure-JAX reference using the same bf16-rounded matmul operands.
    xb = x.astype(jnp.bfloat16).astype(jnp.float32)
    wb = w.astype(jnp.bfloat16).astype(jnp.float32)
    mu_ref = jnp.maximum(xb @ wb.T + b, 0.0)
    prob_ref = jax.nn.softmax(mu_ref, axis=-1)
    logp_ref = jax.nn.log_softmax(mu_ref, axis=-1)
    ent_ref = -jnp.sum(logp_ref * prob_ref, axis=-1, keepdims=True)

    assert log_prob_t.shape == (batch, num_actions)
    assert jnp.allclose(log_prob_t, logp_ref, atol=1e-3), "log_prob mismatch"
    # entropy uses the approx (EUP) reciprocal in-kernel -> looser tolerance.
    assert jnp.allclose(entropy_t, ent_ref, atol=2e-2), "entropy mismatch"
    # Argmax action must achieve the max reference prob (robust to exact ties).
    pmax = jnp.max(prob_ref, axis=-1)
    psel = jnp.take_along_axis(prob_ref, action_t[:, None], axis=-1)[:, 0]
    assert jnp.all(psel >= pmax - 1e-4), "argmax action mismatch"
    # Sampled actions in range; gathered log_prob consistent with full log_prob.
    assert action_env.shape == (batch, 1)
    acts = action_env[:, 0]
    assert jnp.all((acts >= 0) & (acts < num_actions)), "sampled action out of range"
    lp_at_act = jnp.take_along_axis(logp_ref, action_env, axis=-1)
    assert jnp.allclose(log_prob_sel, lp_at_act, atol=1e-3), "gathered log_prob mismatch"

    print("KERNEL_OK")
</pallas_src>

<mosaic_0001>
module attributes {stable_mosaic.version = 11 : i64} {
  func.func @_policy_kernel(%arg0: i32, %arg1: memref<16x32xbf16, #tpu.memory_space<vmem>>, %arg2: memref<128x32xbf16, #tpu.memory_space<vmem>>, %arg3: memref<1x128xf32, #tpu.memory_space<vmem>>, %arg4: memref<16x128xf32, #tpu.memory_space<vmem>>, %arg5: memref<16x128xf32, #tpu.memory_space<vmem>>) attributes {dimension_semantics = [#tpu.dimension_semantics<parallel>], iteration_bounds = array<i64: 1>, scalar_prefetch = 0 : i64, scratch_operands = 0 : i64, tpu.core_type = #tpu.core_type<tc>, window_params = [{transform_indices = @transform_0, window_bounds = array<i64: 16, 32>}, {pipeline_mode = #tpu.pipeline_mode<synchronous>, transform_indices = @transform_1, window_bounds = array<i64: 128, 32>}, {pipeline_mode = #tpu.pipeline_mode<synchronous>, transform_indices = @transform_2, window_bounds = array<i64: 1, 128>}, {transform_indices = @transform_3, window_bounds = array<i64: 16, 128>}, {transform_indices = @transform_4, window_bounds = array<i64: 16, 128>}]} {
    %c0 = arith.constant 0 : index
    %c0_0 = arith.constant 0 : index
    %0 = vector.load %arg1[%c0, %c0_0] : memref<16x32xbf16, #tpu.memory_space<vmem>>, vector<16x32xbf16>
    %c0_1 = arith.constant 0 : index
    %c0_2 = arith.constant 0 : index
    %1 = vector.load %arg2[%c0_1, %c0_2] : memref<128x32xbf16, #tpu.memory_space<vmem>>, vector<128x32xbf16>
    %c0_3 = arith.constant 0 : index
    %c0_4 = arith.constant 0 : index
    %2 = vector.load %arg3[%c0_3, %c0_4] : memref<1x128xf32, #tpu.memory_space<vmem>>, vector<1x128xf32>
    %c0_5 = arith.constant 0 : index
    %c0_6 = arith.constant 0 : index
    %3 = vector.load %arg4[%c0_5, %c0_6] : memref<16x128xf32, #tpu.memory_space<vmem>>, vector<16x128xf32>
    %cst = arith.constant dense<0.000000e+00> : vector<16x128xf32>
    %4 = tpu.matmul %0, %1, %cst {dimension_numbers = #tpu.dot_dimension_numbers<[1], [1], [0], [0], [0, 0, 1, 0], [], []>} : vector<16x32xbf16>, vector<128x32xbf16>, vector<16x128xf32> -> vector<16x128xf32>
    %5 = vector.broadcast %2 : vector<1x128xf32> to vector<16x128xf32>
    %6 = arith.addf %4, %5 : vector<16x128xf32>
    %cst_7 = arith.constant 0.000000e+00 : f32
    %7 = vector.broadcast %cst_7 : f32 to vector<16x128xf32>
    %8 = arith.maximumf %6, %7 : vector<16x128xf32>
    %9 = tpu.iota {dimensions = array<i32: 1>} : vector<16x128xi32>
    %c8_i32 = arith.constant 8 : i32
    %10 = vector.broadcast %c8_i32 : i32 to vector<16x128xi32>
    %11 = arith.cmpi slt, %9, %10 : vector<16x128xi32>
    %cst_8 = arith.constant -1.000000e+30 : f32
    %12 = vector.broadcast %cst_8 : f32 to vector<16x128xf32>
    %13 = arith.select %11, %8, %12 : vector<16x128xi1>, vector<16x128xf32>
    %cst_9 = arith.constant dense<0xFF800000> : vector<16xf32>
    %14 = vector.multi_reduction <maximumf>, %13, %cst_9 [1] : vector<16x128xf32> to vector<16xf32>
    %15 = vector.shape_cast %14 : vector<16xf32> to vector<16x1xf32>
    %16 = vector.broadcast %15 : vector<16x1xf32> to vector<16x128xf32>
    %17 = arith.subf %13, %16 : vector<16x128xf32>
    %18 = math.exp %17 : vector<16x128xf32>
    %cst_10 = arith.constant dense<0.000000e+00> : vector<16xf32>
    %19 = vector.multi_reduction <add>, %18, %cst_10 [1] : vector<16x128xf32> to vector<16xf32>
    %20 = vector.shape_cast %19 : vector<16xf32> to vector<16x1xf32>
    %21 = math.log %20 : vector<16x1xf32>
    %22 = vector.broadcast %21 : vector<16x1xf32> to vector<16x128xf32>
    %23 = arith.subf %17, %22 : vector<16x128xf32>
    %24 = tpu.reciprocal %20 {approx = true} : vector<16x1xf32> -> vector<16x1xf32>
    %25 = arith.mulf %18, %23 : vector<16x128xf32>
    %cst_11 = arith.constant 0.000000e+00 : f32
    %26 = vector.broadcast %cst_11 : f32 to vector<16x128xf32>
    %27 = arith.select %11, %25, %26 : vector<16x128xi1>, vector<16x128xf32>
    %cst_12 = arith.constant dense<0.000000e+00> : vector<16xf32>
    %28 = vector.multi_reduction <add>, %27, %cst_12 [1] : vector<16x128xf32> to vector<16xf32>
    %29 = vector.shape_cast %28 : vector<16xf32> to vector<16x1xf32>
    %cst_13 = arith.constant 0.000000e+00 : f32
    %30 = vector.broadcast %cst_13 : f32 to vector<16x1xf32>
    %31 = arith.subf %30, %29 : vector<16x1xf32>
    %32 = arith.mulf %31, %24 : vector<16x1xf32>
    %33 = vector.broadcast %15 : vector<16x1xf32> to vector<16x128xf32>
    %34 = arith.cmpf oeq, %13, %33 : vector<16x128xf32>
    %c128_i32 = arith.constant 128 : i32
    %35 = vector.broadcast %c128_i32 : i32 to vector<16x128xi32>
    %36 = arith.select %34, %9, %35 : vector<16x128xi1>, vector<16x128xi32>
    %cst_14 = arith.constant dense<2147483647> : vector<16xi32>
    %37 = vector.multi_reduction <minsi>, %36, %cst_14 [1] : vector<16x128xi32> to vector<16xi32>
    %38 = vector.shape_cast %37 : vector<16xi32> to vector<16x1xi32>
    %39 = tpu.reciprocal %3 {approx = true} : vector<16x128xf32> -> vector<16x128xf32>
    %40 = arith.mulf %18, %39 : vector<16x128xf32>
    %cst_15 = arith.constant -1.000000e+00 : f32
    %41 = vector.broadcast %cst_15 : f32 to vector<16x128xf32>
    %42 = arith.select %11, %40, %41 : vector<16x128xi1>, vector<16x128xf32>
    %cst_16 = arith.constant dense<0xFF800000> : vector<16xf32>
    %43 = vector.multi_reduction <maximumf>, %42, %cst_16 [1] : vector<16x128xf32> to vector<16xf32>
    %44 = vector.shape_cast %43 : vector<16xf32> to vector<16x1xf32>
    %45 = vector.broadcast %44 : vector<16x1xf32> to vector<16x128xf32>
    %46 = arith.cmpf oeq, %42, %45 : vector<16x128xf32>
    %c128_i32_17 = arith.constant 128 : i32
    %47 = vector.broadcast %c128_i32_17 : i32 to vector<16x128xi32>
    %48 = arith.select %46, %9, %47 : vector<16x128xi1>, vector<16x128xi32>
    %cst_18 = arith.constant dense<2147483647> : vector<16xi32>
    %49 = vector.multi_reduction <minsi>, %48, %cst_18 [1] : vector<16x128xi32> to vector<16xi32>
    %50 = vector.shape_cast %49 : vector<16xi32> to vector<16x1xi32>
    %51 = vector.broadcast %50 : vector<16x1xi32> to vector<16x128xi32>
    %52 = arith.cmpi eq, %9, %51 : vector<16x128xi32>
    %cst_19 = arith.constant 0.000000e+00 : f32
    %53 = vector.broadcast %cst_19 : f32 to vector<16x128xf32>
    %54 = arith.select %52, %23, %53 : vector<16x128xi1>, vector<16x128xf32>
    %cst_20 = arith.constant dense<0.000000e+00> : vector<16xf32>
    %55 = vector.multi_reduction <add>, %54, %cst_20 [1] : vector<16x128xf32> to vector<16xf32>
    %56 = vector.shape_cast %55 : vector<16xf32> to vector<16x1xf32>
    %cst_21 = arith.constant 0.000000e+00 : f32
    %57 = vector.broadcast %cst_21 : f32 to vector<16x128xf32>
    %58 = arith.select %11, %23, %57 : vector<16x128xi1>, vector<16x128xf32>
    %c8_i32_22 = arith.constant 8 : i32
    %59 = vector.broadcast %c8_i32_22 : i32 to vector<16x128xi32>
    %60 = arith.cmpi eq, %9, %59 : vector<16x128xi32>
    %61 = vector.shape_cast %32 : vector<16x1xf32> to vector<16x1xf32>
    %62 = vector.broadcast %61 : vector<16x1xf32> to vector<16x128xf32>
    %63 = arith.select %60, %62, %58 : vector<16x128xi1>, vector<16x128xf32>
    %c9_i32 = arith.constant 9 : i32
    %64 = vector.broadcast %c9_i32 : i32 to vector<16x128xi32>
    %65 = arith.cmpi eq, %9, %64 : vector<16x128xi32>
    %66 = vector.shape_cast %56 : vector<16x1xf32> to vector<16x1xf32>
    %67 = vector.broadcast %66 : vector<16x1xf32> to vector<16x128xf32>
    %68 = arith.select %65, %67, %63 : vector<16x128xi1>, vector<16x128xf32>
    %c10_i32 = arith.constant 10 : i32
    %69 = vector.broadcast %c10_i32 : i32 to vector<16x128xi32>
    %70 = arith.cmpi eq, %9, %69 : vector<16x128xi32>
    %71 = arith.sitofp %50 : vector<16x1xi32> to vector<16x1xf32>
    %72 = vector.shape_cast %71 : vector<16x1xf32> to vector<16x1xf32>
    %73 = vector.broadcast %72 : vector<16x1xf32> to vector<16x128xf32>
    %74 = arith.select %70, %73, %68 : vector<16x128xi1>, vector<16x128xf32>
    %c11_i32 = arith.constant 11 : i32
    %75 = vector.broadcast %c11_i32 : i32 to vector<16x128xi32>
    %76 = arith.cmpi eq, %9, %75 : vector<16x128xi32>
    %77 = arith.sitofp %38 : vector<16x1xi32> to vector<16x1xf32>
    %78 = vector.shape_cast %77 : vector<16x1xf32> to vector<16x1xf32>
    %79 = vector.broadcast %78 : vector<16x1xf32> to vector<16x128xf32>
    %80 = arith.select %76, %79, %74 : vector<16x128xi1>, vector<16x128xf32>
    %c0_23 = arith.constant 0 : index
    %c0_24 = arith.constant 0 : index
    %81 = vector.load %arg5[%c0_23, %c0_24] : memref<16x128xf32, #tpu.memory_space<vmem>>, vector<16x128xf32>
    tpu.vector_store %arg5[%c0_23, %c0_24], %80 {strides = array<i32>} : memref<16x128xf32, #tpu.memory_space<vmem>>, vector<16x128xf32>,
    return
  }
  func.func @transform_0(%arg0: i32) -> (i32, i32) {
    %c0_i32 = arith.constant 0 : i32
    %c0_i32_0 = arith.constant 0 : i32
    return %arg0, %c0_i32 : i32, i32
  }
  func.func @transform_1(%arg0: i32) -> (i32, i32) {
    %c0_i32 = arith.constant 0 : i32
    %c0_i32_0 = arith.constant 0 : i32
    %c0_i32_1 = arith.constant 0 : i32
    return %c0_i32, %c0_i32_0 : i32, i32
  }
  func.func @transform_2(%arg0: i32) -> (i32, i32) {
    %c0_i32 = arith.constant 0 : i32
    %c0_i32_0 = arith.constant 0 : i32
    %c0_i32_1 = arith.constant 0 : i32
    return %c0_i32, %c0_i32_0 : i32, i32
  }
  func.func @transform_3(%arg0: i32) -> (i32, i32) {
    %c0_i32 = arith.constant 0 : i32
    %c0_i32_0 = arith.constant 0 : i32
    return %arg0, %c0_i32 : i32, i32
  }
  func.func @transform_4(%arg0: i32) -> (i32, i32) {
    %c0_i32 = arith.constant 0 : i32
    %c0_i32_0 = arith.constant 0 : i32
    return %arg0, %c0_i32 : i32, i32
  }
}

</mosaic_0001>

<bundles_post_ra>
// kernel: policy_head.1
= control target key start
LH: loop header
LB: loop body
LE: loop exit
PB: predicated region body
PF: predicated region fallthrough
CT: control target
= control target key end

     0   :  { %vm86_vm0 = vcmask 261120   ;;  %v130_v17 = vlaneseq  ;;  %s477_s1 = inlined_call_operand.vmem [shape: bf16[128,32], index: 1, kind: input, shape index: {}]   ;;  %s478_s2 = inlined_call_operand.vmem [shape: f32[1,128], index: 2, kind: input, shape index: {}]   ;;  %s479_s0 = inlined_call_operand.vmem [shape: bf16[16,32], index: 0, kind: input, shape index: {}]   ;;  %s480_s3 = inlined_call_operand.vmem [shape: f32[16,128], index: 3, kind: input, shape index: {}]   ;;  %s481_s4 = inlined_call_operand.vmem [shape: f32[16,128], index: 4, kind: output, shape index: {}]  }
   0x1   :  { %v320_v0 = vld [vmem:[%s477_s1 + $0x38] sm:$0xff]  ;;  %v319_v2 = vld [vmem:[%s477_s1 + $0x30] sm:$0xff]  ;;  %v318_v4 = vld [vmem:[%s477_s1 + $0x28] sm:$0xff] }
   0x2   :  { %v112_v1 = vsel %vm86_vm0, %v320_v0, 0  ;;  %v109_v3 = vsel %vm86_vm0, %v319_v2, 0  ;;  %v106_v5 = vsel %vm86_vm0, %v318_v4, 0  ;;  %v317_v6 = vld [vmem:[%s477_s1 + $0x20] sm:$0xff]  ;;  %v316_v8 = vld [vmem:[%s477_s1 + $0x18] sm:$0xff]  ;;  %v315_v10 = vld [vmem:[%s477_s1 + $0x10] sm:$0xff] }
   0x3   :  { %114 = vmatpush.bf16.xpose.msra.mxu0 %v112_v1  ;;  %v103_v7 = vsel %vm86_vm0, %v317_v6, 0  ;;  %v100_v9 = vsel %vm86_vm0, %v316_v8, 0  ;;  %v97_v11 = vsel %vm86_vm0, %v315_v10, 0  ;;  %v314_v12 = vld [vmem:[%s477_s1 + $0x8] sm:$0xff]  ;;  %v313_v14 = vld [vmem:[%s477_s1] sm:$0xff]  ;;  %v402_v19 = vand.u32 127, %v130_v17 }
   0x4   :  { %v94_v13 = vsel %vm86_vm0, %v314_v12, 0  ;;  %v91_v15 = vsel %vm86_vm0, %v313_v14, 0  ;;  %v312_v16 = vld [vmem:[%s479_s0] sm:$0xff]  ;;  %v37_v33 = vld [vmem:[%s480_s3 + $0x8] sm:$0xff] }
   0x5   :  { %v321_v18 = vld [vmem:[%s478_s2] ss:$0 sm:$0xff]  ;;  %vm132_vm1 = vcmp.lt.s32.totalorder %v402_v19, 8  ;;  %vm253_vm12 = vcmp.eq.s32.totalorder %v402_v19, 8  ;;  %vm256_vm13 = vcmp.eq.s32.totalorder %v402_v19, 9  ;;  %vm259_vm14 = vcmp.eq.s32.totalorder %v402_v19, 10 }
   0x6   :  { %v36_v29 = vld [vmem:[%s480_s3] sm:$0xff]  ;;  %vm264_vm15 = vcmp.eq.s32.totalorder %v402_v19, 11 }
   0x7   :  { %322 = vrcp.f32 %v36_v29 }
   0xb   :  { %115 = vmatpush.bf16.xpose.msra.mxu0 %v109_v3 }
   0xd   :  { %v323_v34 = vpop.eup %322 }
  0x13   :  { %116 = vmatpush.bf16.xpose.msra.mxu0 %v106_v5 }
  0x1b   :  { %117 = vmatpush.bf16.xpose.msra.mxu0 %v103_v7 }
  0x23   :  { %118 = vmatpush.bf16.xpose.msra.mxu0 %v100_v9 }
  0x2b   :  { %119 = vmatpush.bf16.xpose.msra.mxu0 %v97_v11 }
  0x33   :  { %120 = vmatpush.bf16.xpose.msra.mxu0 %v94_v13 }
  0x3b   :  { %121 = vmatpush.bf16.xpose.msra.mxu0 %v91_v15 }
  0x42   :  { %311 = vmatmul.msk.bf16.vlgmr.msra.gmra.mxu0 %vm86_vm0, %v312_v16 }
  0xbf   :  { %v123_v20 = vpop.f32.mrf.mxu0 }
  0xc0   :  { %v124_v21 = vadd.f32 %v321_v18, %v123_v20 }
  0xc2   :  { %v128_v22 = vmax.f32 %v124_v21, 0.0 }
  0xc4   :  { %v133_v23 = vsel %vm132_vm1, %v128_v22, -1e+30 }
  0xc5   :  { %135 = vmax.xlane.f32.xlu0 %v133_v23 }
  0xc7   :  { %v125_v24 = vpop.f32.mrf.mxu0 }
  0xc8   :  { %v126_v25 = vadd.f32 %v321_v18, %v125_v24 }
  0xca   :  { %v129_v26 = vmax.f32 %v126_v25, 0.0 }
  0xcc   :  { %v134_v27 = vsel %vm132_vm1, %v129_v26, -1e+30 }
  0xcd   :  { %137 = vmax.xlane.f32.xlu0 %v134_v27 }
 0x138   :  { %v136_v28 = vpop.xlane.xlu0 %135 }
 0x139   :  { %v139_v30 = vsub.f32 %v133_v23, %v136_v28  ;;  %vm169_vm5 = vcmp.eq.f32.partialorder %v133_v23, %v136_v28 }
 0x13a   :  { %v171_v63 = vsel %vm169_vm5, %v402_v19, 128 }
 0x13b   :  { %v141_v31 = vmul.f32 1.442695, %v139_v30  ;;  %v174_v1 = vshra.s32 %v171_v63, 16  ;;  %v173_v18 = vand.u32 65535, %v171_v63 }
 0x13d   :  { %324 = vpow2.f32 %v141_v31  ;;  %v176_v3 = vcvt.s32.f32 %v174_v1  ;;  %v175_v21 = vcvt.s32.f32 %v173_v18 }
 0x13e   :  { %326 = vrcp.f32 %v37_v33 }
 0x140   :  { %v138_v32 = vpop.xlane.xlu0 %137 }
 0x141   :  { %v140_v35 = vsub.f32 %v134_v27, %v138_v32  ;;  %vm170_vm2 = vcmp.eq.f32.partialorder %v134_v27, %v138_v32 }
 0x142   :  { %v172_v38 = vsel %vm170_vm2, %v402_v19, 128 }
 0x143   :  { %v325_v36 = vpop.eup %324  ;;  %v143_v37 = vmul.f32 1.442695, %v140_v35  ;;  %v188_v41 = vshra.s32 %v172_v38, 16  ;;  %v187_v62 = vand.u32 65535, %v172_v38 }
 0x144   :  { %145 = vadd.xlane.f32.xlu0 %v325_v36  ;;  %v203_v39 = vmul.f32 %v325_v36, %v323_v34  ;;  %v327_v42 = vpop.eup %326 }
 0x145   :  { %328 = vpow2.f32 %v143_v37  ;;  %v190_v43 = vcvt.s32.f32 %v188_v41  ;;  %v189_v0 = vcvt.s32.f32 %v187_v62 }
 0x146   :  { %v205_v40 = vsel %vm132_vm1, %v203_v39, -1.0 }
 0x147   :  { %207 = vmax.xlane.f32.xlu1 %v205_v40 }
 0x14b   :  { %v329_v44 = vpop.eup %328 }
 0x14c   :  { %191 = vmin.xlane.f32.xlu0 %v190_v43  ;;  %v204_v45 = vmul.f32 %v329_v44, %v327_v42 }
 0x14e   :  { %v206_v46 = vsel %vm132_vm1, %v204_v45, -1.0 }
 0x14f   :  { %209 = vmax.xlane.f32.xlu1 %v206_v46 }
 0x157   :  { %147 = vadd.xlane.f32.xlu1 %v329_v44 }
 0x1b7   :  { %v420_v47 = vpop.xlane.xlu0 %145 }
 0x1b8   :  { %330 = vlog2.f32 %v420_v47 }
 0x1ba   :  { %v208_v48 = vpop.xlane.xlu1 %207 }
 0x1bb   :  { %vm211_vm3 = vcmp.eq.f32.partialorder %v205_v40, %v208_v48 }
 0x1bc   :  { %v213_v49 = vsel %vm211_vm3, %v402_v19, 128 }
 0x1bd   :  { %v216_v50 = vshra.s32 %v213_v49, 16  ;;  %v215_v6 = vand.u32 65535, %v213_v49 }
 0x1be   :  { %v331_v51 = vpop.eup %330 }
 0x1bf   :  { %v150_v52 = vmul.f32 0.6931472, %v331_v51  ;;  %v218_v53 = vcvt.s32.f32 %v216_v50  ;;  %v430_v60 = vpop.xlane.xlu0 %191  ;;  %v217_v9 = vcvt.s32.f32 %v215_v6 }
 0x1c0   :  { %vm193_vm6 = vcmp.eq.f32.partialorder %v190_v43, %v430_v60 }
 0x1c1   :  { %v424_v54 = vsub.f32 %v139_v30, %v150_v52  ;;  %219 = vmin.xlane.f32.xlu2 %v218_v53  ;;  %v194_v2 = vsel %vm193_vm6, %v189_v0, inf }
 0x1c2   :  { %v210_v55 = vpop.xlane.xlu1 %209 }
 0x1c3   :  { %vm212_vm4 = vcmp.eq.f32.partialorder %v206_v46, %v210_v55  ;;  %v157_v56 = vmul.f32 %v325_v36, %v424_v54  ;;  %v198_v46 = vcvt.f32.s32 %v430_v60 }
 0x1c4   :  { %v214_v57 = vsel %vm212_vm4, %v402_v19, 128 }
 0x1c5   :  { %v159_v58 = vsel %vm132_vm1, %v157_v56, 0.0  ;;  %v230_v59 = vshra.s32 %v214_v57, 16  ;;  %v229_v12 = vand.u32 65535, %v214_v57 }
 0x1c6   :  { %161 = vadd.xlane.f32.xlu0 %v159_v58 }
 0x1c7   :  { %v232_v61 = vcvt.s32.f32 %v230_v59  ;;  %v231_v15 = vcvt.s32.f32 %v229_v12 }
 0x1c9   :  { %233 = vmin.xlane.f32.xlu2 %v232_v61 }
 0x1ca   :  { %v148_v4 = vpop.xlane.xlu1 %147 }
 0x1cb   :  { %332 = vlog2.f32 %v148_v4 }
 0x1cc   :  { %334 = vrcp.f32 %v420_v47  ;;  %v251_v47 = vsel %vm132_vm1, %v424_v54, 0.0 }
 0x1cd   :  { %336 = vrcp.f32 %v148_v4 }
 0x1ce   :  { %195 = vmin.xlane.f32.xlu0 %v194_v2 }
 0x1d1   :  { %177 = vmin.xlane.f32.xlu2 %v176_v3  ;;  %v333_v5 = vpop.eup %332 }
 0x1d2   :  { %v152_v7 = vmul.f32 0.6931472, %v333_v5  ;;  %v335_v41 = vpop.eup %334 }
 0x1d3   :  { %v337_v57 = vpop.eup %336 }
 0x1d4   :  { %v434_v10 = vsub.f32 %v140_v35, %v152_v7 }
 0x1d6   :  { %v158_v13 = vmul.f32 %v329_v44, %v434_v10 }
 0x1d8   :  { %v160_v17 = vsel %vm132_vm1, %v158_v13, 0.0 }
 0x234   :  { %v220_v8 = vpop.xlane.xlu2 %219 }
 0x235   :  { %vm221_vm7 = vcmp.eq.f32.partialorder %v218_v53, %v220_v8  ;;  %v226_v23 = vcvt.f32.s32 %v220_v8 }
 0x236   :  { %v222_v11 = vsel %vm221_vm7, %v217_v9, inf }
 0x237   :  { %223 = vmin.xlane.f32.xlu1 %v222_v11  ;;  %v227_v25 = vshll.u32 %v226_v23, 16 }
 0x239   :  { %v162_v35 = vpop.xlane.xlu0 %161 }
 0x23a   :  { %v165_v38 = vsub.f32 0.0, %v162_v35 }
 0x23c   :  { %v234_v14 = vpop.xlane.xlu2 %233  ;;  %v167_v43 = vmul.f32 %v335_v41, %v165_v38 }
 0x23d   :  { %vm235_vm8 = vcmp.eq.f32.partialorder %v232_v61, %v234_v14  ;;  %v240_v28 = vcvt.f32.s32 %v234_v14  ;;  %v252_v61 = vsel %vm132_vm1, %v434_v10, 0.0 }
 0x23e   :  { %v236_v16 = vsel %vm235_vm8, %v231_v15, inf  ;;  %v254_v51 = vsel %vm253_vm12, %v167_v43, %v251_v47 }
 0x23f   :  { %237 = vmin.xlane.f32.xlu2 %v236_v16  ;;  %163 = vadd.xlane.f32.xlu1 %v160_v17  ;;  %v241_v31 = vshll.u32 %v240_v28, 16 }
 0x241   :  { %v196_v45 = vpop.xlane.xlu0 %195 }
 0x242   :  { %v197_v52 = vcvt.f32.s32 %v196_v45 }
 0x244   :  { %v178_v20 = vpop.xlane.xlu2 %177 }
 0x245   :  { %vm179_vm9 = vcmp.eq.f32.partialorder %v176_v3, %v178_v20  ;;  %v184_v37 = vcvt.f32.s32 %v178_v20 }
 0x246   :  { %v180_v22 = vsel %vm179_vm9, %v175_v21, inf }
 0x247   :  { %181 = vmin.xlane.f32.xlu2 %v180_v22  ;;  %v185_v42 = vshll.u32 %v184_v37, 16 }
 0x2aa   :  { %v224_v24 = vpop.xlane.xlu1 %223 }
 0x2ab   :  { %v225_v26 = vcvt.f32.s32 %v224_v24 }
 0x2ad   :  { %v228_v27 = vadd.s32 %v227_v25, %v225_v26 }
 0x2af   :  { %vm243_vm10 = vcmp.eq.s32.totalorder %v402_v19, %v228_v27  ;;  %v260_v48 = vcvt.s32.f32 %v228_v27 }
 0x2b0   :  { %v245_v29 = vsel %vm243_vm10, %v424_v54, 0.0  ;;  %v199_v54 = vshll.u32 %v198_v46, 16 }
 0x2b1   :  { %247 = vadd.xlane.f32.xlu1 %v245_v29 }
 0x2b2   :  { %v238_v30 = vpop.xlane.xlu2 %237  ;;  %v164_v39 = vpop.xlane.xlu1 %163  ;;  %v200_v60 = vadd.s32 %v199_v54, %v197_v52 }
 0x2b3   :  { %v239_v32 = vcvt.f32.s32 %v238_v30  ;;  %v166_v49 = vsub.f32 0.0, %v164_v39 }
 0x2b4   :  { %v266_v1 = vcvt.s32.f32 %v200_v60 }
 0x2b5   :  { %v242_v33 = vadd.s32 %v241_v31, %v239_v32  ;;  %v168_v59 = vmul.f32 %v337_v57, %v166_v49 }
 0x2b7   :  { %vm244_vm11 = vcmp.eq.s32.totalorder %v402_v19, %v242_v33  ;;  %v261_v62 = vcvt.s32.f32 %v242_v33  ;;  %v255_v0 = vsel %vm253_vm12, %v168_v59, %v252_v61 }
 0x2b8   :  { %v246_v34 = vsel %vm244_vm11, %v434_v10, 0.0 }
 0x2b9   :  { %249 = vadd.xlane.f32.xlu2 %v246_v34 }
 0x2ba   :  { %v182_v36 = vpop.xlane.xlu2 %181 }
 0x2bb   :  { %v183_v40 = vcvt.f32.s32 %v182_v36 }
 0x2bd   :  { %v186_v44 = vadd.s32 %v185_v42, %v183_v40 }
 0x2bf   :  { %v265_v53 = vcvt.s32.f32 %v186_v44 }
 0x324   :  { %v248_v50 = vpop.xlane.xlu1 %247 }
 0x325   :  { %v257_v55 = vsel %vm256_vm13, %v248_v50, %v254_v51 }
 0x326   :  { %v262_v56 = vsel %vm259_vm14, %v260_v48, %v257_v55 }
 0x327   :  { %v267_v58 = vsel %vm264_vm15, %v265_v53, %v262_v56 }
 0x328   :  { %269 = vst [vmem:[%s481_s4] sm:$0xff] %v267_v58 }
 0x32c   :  { %v250_v63 = vpop.xlane.xlu2 %249 }
 0x32d   :  { %v258_v2 = vsel %vm256_vm13, %v250_v63, %v255_v0 }
 0x32e   :  { %v263_v3 = vsel %vm259_vm14, %v261_v62, %v258_v2 }
 0x32f   :  { %v268_v4 = vsel %vm264_vm15, %v266_v1, %v263_v3 }
 0x330   :  { %270 = vst [vmem:[%s481_s4 + $0x8] sm:$0xff] %v268_v4 }

</bundles_post_ra>
